<compile_context>
chip_gen: v7x
topology: tpu7x:2x2x1
jax: 0.10.0
libtpu: 0.0.40
codegen_flags: <defaults>
</compile_context>

<pallas_src>
import math

import jax
import jax.numpy as jnp
from jax.experimental import pallas as pl
from jax.experimental.pallas import tpu as pltpu

STATE_DIM = 4       # InvertedPendulum observation dim
ACTION_DIM = 1      # InvertedPendulum action dim
N_LATENT = 64
FUSED = 2 * N_LATENT          # 128 lanes: [action branch | value branch]
HEAD_W = 128                  # packed head weight width (MXU-tile shaped)
OUT_W = 8                     # packed output lanes (0..4 used, rest padding)

_LOG_SQRT_2PI = math.log(math.sqrt(2.0 * math.pi))   # == 0.5*log(2*pi)


def _round_up(x, m):
    return ((x + m - 1) // m) * m


def _fused_kernel(state_ref, action_ref,
                  w1_ref, b1_ref, w2_ref, b2_ref, w3_ref, b3_ref,
                  out_ref):
    s = state_ref[...]          # (TB, STATE_DIM)
    a = action_ref[...]         # (TB, 1)

    # layer 1: one lane-full matmul computes both branches' first hidden layer
    x = jnp.tanh(jnp.dot(s, w1_ref[...], preferred_element_type=jnp.float32)
                 + b1_ref[...])                                  # (TB,128) = [h1|v1]
    # layer 2: block-diagonal packed weight keeps the branches independent
    x = jnp.tanh(jnp.dot(x, w2_ref[...], preferred_element_type=jnp.float32)
                 + b2_ref[...])                                  # (TB,128) = [h2|v2]
    # heads: one matmul produces value / mean / std_pre in lanes 0 / 1 / 2
    head = (jnp.dot(x, w3_ref[...], preferred_element_type=jnp.float32)
            + b3_ref[...])                                       # (TB,128)

    value = head[:, 0:1]
    mean = head[:, 1:2]
    std_pre = head[:, 2:3]

    # std = log(exp(x) + 1), exactly as in the PyTorch model
    std = jnp.log(jnp.exp(std_pre) + 1.0)
    log_scale = jnp.log(std)
    var = std * std
    # EUP approximate reciprocal instead of a VALU iterative divide
    inv_two_var = pl.reciprocal(2.0 * var, approx=True)
    diff = a - mean
    logprob = -(diff * diff) * inv_two_var - log_scale - _LOG_SQRT_2PI
    entropy = 0.5 + _LOG_SQRT_2PI + log_scale      # 0.5 + 0.5*log(2*pi) + log(std)

    # Build the packed (TB, OUT_W) slab with lane-mask selects -> one dense store.
    lane = jax.lax.broadcasted_iota(jnp.int32, out_ref.shape, 1)
    out = jnp.where(lane == 0, value, 0.0)
    out = jnp.where(lane == 1, mean, out)
    out = jnp.where(lane == 2, std, out)
    out = jnp.where(lane == 3, logprob, out)
    out = jnp.where(lane == 4, entropy, out)
    out_ref[...] = out


def pack_params(params):
    """One-time host-side packing of per-layer weights into 3 fused matrices."""
    (wa1, ba1, wa2, ba2, wm, bm, ws, bs,
     wv1, bv1, wv2, bv2, wv3, bv3) = params
    f32 = jnp.float32

    w1 = jnp.concatenate([wa1, wv1], axis=1)            # (STATE_DIM, 128)
    b1 = jnp.concatenate([ba1, bv1], axis=1)            # (1, 128)

    w2 = jnp.zeros((FUSED, FUSED), f32)
    w2 = w2.at[:N_LATENT, :N_LATENT].set(wa2)
    w2 = w2.at[N_LATENT:, N_LATENT:].set(wv2)
    b2 = jnp.concatenate([ba2, bv2], axis=1)            # (1, 128)

    w3 = jnp.zeros((FUSED, HEAD_W), f32)
    w3 = w3.at[N_LATENT:, 0:1].set(wv3)                 # value   <- value branch
    w3 = w3.at[:N_LATENT, 1:2].set(wm)                  # mean    <- action branch
    w3 = w3.at[:N_LATENT, 2:3].set(ws)                  # std_pre <- action branch
    b3 = jnp.zeros((1, HEAD_W), f32)
    b3 = b3.at[:, 0:1].set(bv3).at[:, 1:2].set(bm).at[:, 2:3].set(bs)

    return (w1, b1, w2, b2, w3, b3)


def model_forward(state, action, packed_params, *, batch_tile=256):
    """Evaluate-mode forward. Returns (entropy_mean, logprob, value, mean, std)."""
    B = state.shape[0]
    w1, b1, w2, b2, w3, b3 = packed_params

    tb = min(batch_tile, _round_up(B, 8))
    b_pad = _round_up(B, tb)
    if b_pad != B:
        state = jnp.pad(state, ((0, b_pad - B), (0, 0)))
        action = jnp.pad(action, ((0, b_pad - B), (0, 0)))

    batch = lambda i: (i, 0)     # batch-tiled arrays
    const = lambda i: (0, 0)     # weights/biases stay resident across grid steps

    packed = pl.pallas_call(
        _fused_kernel,
        out_shape=jax.ShapeDtypeStruct((b_pad, OUT_W), jnp.float32),
        grid_spec=pltpu.PrefetchScalarGridSpec(
            num_scalar_prefetch=0,
            grid=(b_pad // tb,),
            in_specs=[
                pl.BlockSpec((tb, STATE_DIM), batch),
                pl.BlockSpec((tb, ACTION_DIM), batch),
                pl.BlockSpec((STATE_DIM, FUSED), const),
                pl.BlockSpec((1, FUSED), const),
                pl.BlockSpec((FUSED, FUSED), const),
                pl.BlockSpec((1, FUSED), const),
                pl.BlockSpec((FUSED, HEAD_W), const),
                pl.BlockSpec((1, HEAD_W), const),
            ],
            out_specs=pl.BlockSpec((tb, OUT_W), batch),
        ),
        compiler_params=pltpu.CompilerParams(
            dimension_semantics=("parallel",),
            vmem_limit_bytes=32 * 1024 * 1024,
        ),
    )(state, action, w1, b1, w2, b2, w3, b3)

    packed = packed[:B]
    value = packed[:, 0:1]
    mean = packed[:, 1:2]
    std = packed[:, 2:3]
    logprob = packed[:, 3:4]
    entropy = packed[:, 4:5]
    entropy_mean = jnp.mean(entropy)   # tiny glue reduction outside the kernel
    return entropy_mean, logprob, value, mean, std


def _linear_init(key, fan_in, fan_out):
    """nn.Linear-style init: U(-1/sqrt(fan_in), 1/sqrt(fan_in)); weight as [in, out]."""
    kw, kb = jax.random.split(key)
    bound = 1.0 / math.sqrt(fan_in)
    w = jax.random.uniform(kw, (fan_in, fan_out), jnp.float32, -bound, bound)
    b = jax.random.uniform(kb, (1, fan_out), jnp.float32, -bound, bound)
    return w, b


def make_params(key):
    keys = jax.random.split(key, 8)
    wa1, ba1 = _linear_init(keys[0], STATE_DIM, N_LATENT)   # action_layer[0]
    wa2, ba2 = _linear_init(keys[1], N_LATENT, N_LATENT)    # action_layer[2]
    wm, bm = _linear_init(keys[2], N_LATENT, ACTION_DIM)    # policy_mean_net
    ws, bs = _linear_init(keys[3], N_LATENT, ACTION_DIM)    # policy_stddev_net
    wv1, bv1 = _linear_init(keys[4], STATE_DIM, N_LATENT)   # value_layer[0]
    wv2, bv2 = _linear_init(keys[5], N_LATENT, N_LATENT)    # value_layer[2]
    wv3, bv3 = _linear_init(keys[6], N_LATENT, 1)           # value_layer[4]
    # NOTE: self.affine (Linear(state_dim, n_latent_var)) is unused in forward().
    return (wa1, ba1, wa2, ba2, wm, bm, ws, bs,
            wv1, bv1, wv2, bv2, wv3, bv3)


def reference_forward(state, action, params):
    """Pure-JAX reference of the same math (exact division in log_prob)."""
    (wa1, ba1, wa2, ba2, wm, bm, ws, bs,
     wv1, bv1, wv2, bv2, wv3, bv3) = params
    h = jnp.tanh(state @ wa1 + ba1)
    h = jnp.tanh(h @ wa2 + ba2)
    mean = h @ wm + bm
    std = jnp.log(jnp.exp(h @ ws + bs) + 1.0)
    v = jnp.tanh(state @ wv1 + bv1)
    v = jnp.tanh(v @ wv2 + bv2)
    value = v @ wv3 + bv3
    log_scale = jnp.log(std)
    logprob = (-((action - mean) ** 2) / (2.0 * std * std) - log_scale
               - math.log(math.sqrt(2.0 * math.pi)))
    entropy = 0.5 + 0.5 * math.log(2.0 * math.pi) + log_scale
    return jnp.mean(entropy), logprob, value, mean, std


if __name__ == "__main__":
    key = jax.random.PRNGKey(0)
    kp, ks, ka = jax.random.split(key, 3)

    B = 8  # small batch of (state, action) pairs for the evaluate-mode forward
    params = make_params(kp)
    packed_params = pack_params(params)
    state = jax.random.normal(ks, (B, STATE_DIM), jnp.float32)
    action = jax.random.normal(ka, (B, ACTION_DIM), jnp.float32)

    out = model_forward(state, action, packed_params)
    out = jax.block_until_ready(out)

    # sanity check vs pure-JAX reference
    ref = reference_forward(state, action, params)
    names = ["entropy_mean", "logprob", "value", "mean", "std"]
    for name, o, r in zip(names, out, ref):
        # logprob uses the EUP approximate reciprocal -> allow a looser tolerance
        tol = 2e-2 if name == "logprob" else 1e-5
        assert jnp.allclose(o, r, atol=tol, rtol=tol), (name, o, r)

    print("KERNEL_OK")
</pallas_src>

<mosaic_0001>
module attributes {stable_mosaic.version = 11 : i64} {
  func.func @_fused_kernel(%arg0: i32, %arg1: memref<8x4xf32, #tpu.memory_space<vmem>>, %arg2: memref<8x1xf32, #tpu.memory_space<vmem>>, %arg3: memref<4x128xf32, #tpu.memory_space<vmem>>, %arg4: memref<1x128xf32, #tpu.memory_space<vmem>>, %arg5: memref<128x128xf32, #tpu.memory_space<vmem>>, %arg6: memref<1x128xf32, #tpu.memory_space<vmem>>, %arg7: memref<128x128xf32, #tpu.memory_space<vmem>>, %arg8: memref<1x128xf32, #tpu.memory_space<vmem>>, %arg9: memref<8x8xf32, #tpu.memory_space<vmem>>) attributes {dimension_semantics = [#tpu.dimension_semantics<parallel>], iteration_bounds = array<i64: 1>, scalar_prefetch = 0 : i64, scratch_operands = 0 : i64, tpu.core_type = #tpu.core_type<tc>, window_params = [{transform_indices = @transform_0, window_bounds = array<i64: 8, 4>}, {transform_indices = @transform_1, window_bounds = array<i64: 8, 1>}, {pipeline_mode = #tpu.pipeline_mode<synchronous>, transform_indices = @transform_2, window_bounds = array<i64: 4, 128>}, {pipeline_mode = #tpu.pipeline_mode<synchronous>, transform_indices = @transform_3, window_bounds = array<i64: 1, 128>}, {pipeline_mode = #tpu.pipeline_mode<synchronous>, transform_indices = @transform_4, window_bounds = array<i64: 128, 128>}, {pipeline_mode = #tpu.pipeline_mode<synchronous>, transform_indices = @transform_5, window_bounds = array<i64: 1, 128>}, {pipeline_mode = #tpu.pipeline_mode<synchronous>, transform_indices = @transform_6, window_bounds = array<i64: 128, 128>}, {pipeline_mode = #tpu.pipeline_mode<synchronous>, transform_indices = @transform_7, window_bounds = array<i64: 1, 128>}, {transform_indices = @transform_8, window_bounds = array<i64: 8, 8>}]} {
    %c0 = arith.constant 0 : index
    %c0_0 = arith.constant 0 : index
    %0 = vector.load %arg1[%c0, %c0_0] : memref<8x4xf32, #tpu.memory_space<vmem>>, vector<8x4xf32>
    %c0_1 = arith.constant 0 : index
    %c0_2 = arith.constant 0 : index
    %1 = vector.load %arg2[%c0_1, %c0_2] : memref<8x1xf32, #tpu.memory_space<vmem>>, vector<8x1xf32>
    %c0_3 = arith.constant 0 : index
    %c0_4 = arith.constant 0 : index
    %2 = vector.load %arg3[%c0_3, %c0_4] : memref<4x128xf32, #tpu.memory_space<vmem>>, vector<4x128xf32>
    %cst = arith.constant dense<0.000000e+00> : vector<8x128xf32>
    %3 = tpu.matmul %0, %2, %cst {dimension_numbers = #tpu.dot_dimension_numbers<[1], [0], [0], [1], [0, 0, 1, 1], [], []>} : vector<8x4xf32>, vector<4x128xf32>, vector<8x128xf32> -> vector<8x128xf32>
    %c0_5 = arith.constant 0 : index
    %c0_6 = arith.constant 0 : index
    %4 = vector.load %arg4[%c0_5, %c0_6] : memref<1x128xf32, #tpu.memory_space<vmem>>, vector<1x128xf32>
    %5 = vector.broadcast %4 : vector<1x128xf32> to vector<8x128xf32>
    %6 = arith.addf %3, %5 : vector<8x128xf32>
    %7 = math.tanh %6 : vector<8x128xf32>
    %c0_7 = arith.constant 0 : index
    %c0_8 = arith.constant 0 : index
    %8 = vector.load %arg5[%c0_7, %c0_8] : memref<128x128xf32, #tpu.memory_space<vmem>>, vector<128x128xf32>
    %cst_9 = arith.constant dense<0.000000e+00> : vector<8x128xf32>
    %9 = tpu.matmul %7, %8, %cst_9 {dimension_numbers = #tpu.dot_dimension_numbers<[1], [0], [0], [1], [0, 0, 1, 1], [], []>} : vector<8x128xf32>, vector<128x128xf32>, vector<8x128xf32> -> vector<8x128xf32>
    %c0_10 = arith.constant 0 : index
    %c0_11 = arith.constant 0 : index
    %10 = vector.load %arg6[%c0_10, %c0_11] : memref<1x128xf32, #tpu.memory_space<vmem>>, vector<1x128xf32>
    %11 = vector.broadcast %10 : vector<1x128xf32> to vector<8x128xf32>
    %12 = arith.addf %9, %11 : vector<8x128xf32>
    %13 = math.tanh %12 : vector<8x128xf32>
    %c0_12 = arith.constant 0 : index
    %c0_13 = arith.constant 0 : index
    %14 = vector.load %arg7[%c0_12, %c0_13] : memref<128x128xf32, #tpu.memory_space<vmem>>, vector<128x128xf32>
    %cst_14 = arith.constant dense<0.000000e+00> : vector<8x128xf32>
    %15 = tpu.matmul %13, %14, %cst_14 {dimension_numbers = #tpu.dot_dimension_numbers<[1], [0], [0], [1], [0, 0, 1, 1], [], []>} : vector<8x128xf32>, vector<128x128xf32>, vector<8x128xf32> -> vector<8x128xf32>
    %c0_15 = arith.constant 0 : index
    %c0_16 = arith.constant 0 : index
    %16 = vector.load %arg8[%c0_15, %c0_16] : memref<1x128xf32, #tpu.memory_space<vmem>>, vector<1x128xf32>
    %17 = vector.broadcast %16 : vector<1x128xf32> to vector<8x128xf32>
    %18 = arith.addf %15, %17 : vector<8x128xf32>
    %19 = vector.extract_strided_slice %18 {offsets = [0, 0], sizes = [8, 1], strides = [1, 1]} : vector<8x128xf32> to vector<8x1xf32>
    %20 = vector.extract_strided_slice %18 {offsets = [0, 1], sizes = [8, 1], strides = [1, 1]} : vector<8x128xf32> to vector<8x1xf32>
    %21 = vector.extract_strided_slice %18 {offsets = [0, 2], sizes = [8, 1], strides = [1, 1]} : vector<8x128xf32> to vector<8x1xf32>
    %22 = math.exp %21 : vector<8x1xf32>
    %cst_17 = arith.constant 1.000000e+00 : f32
    %23 = vector.broadcast %cst_17 : f32 to vector<8x1xf32>
    %24 = arith.addf %22, %23 : vector<8x1xf32>
    %25 = math.log %24 : vector<8x1xf32>
    %26 = math.log %25 : vector<8x1xf32>
    %27 = arith.mulf %25, %25 : vector<8x1xf32>
    %cst_18 = arith.constant 2.000000e+00 : f32
    %28 = vector.broadcast %cst_18 : f32 to vector<8x1xf32>
    %29 = arith.mulf %28, %27 : vector<8x1xf32>
    %30 = tpu.reciprocal %29 {approx = true} : vector<8x1xf32> -> vector<8x1xf32>
    %31 = arith.subf %1, %20 : vector<8x1xf32>
    %32 = arith.mulf %31, %31 : vector<8x1xf32>
    %cst_19 = arith.constant 0.000000e+00 : f32
    %33 = vector.broadcast %cst_19 : f32 to vector<8x1xf32>
    %34 = arith.subf %33, %32 : vector<8x1xf32>
    %35 = arith.mulf %34, %30 : vector<8x1xf32>
    %36 = arith.subf %35, %26 : vector<8x1xf32>
    %cst_20 = arith.constant 0.918938517 : f32
    %37 = vector.broadcast %cst_20 : f32 to vector<8x1xf32>
    %38 = arith.subf %36, %37 : vector<8x1xf32>
    %cst_21 = arith.constant 1.41893852 : f32
    %39 = vector.broadcast %cst_21 : f32 to vector<8x1xf32>
    %40 = arith.addf %39, %26 : vector<8x1xf32>
    %41 = tpu.iota {dimensions = array<i32: 1>} : vector<8x8xi32>
    %c0_i32 = arith.constant 0 : i32
    %42 = vector.broadcast %c0_i32 : i32 to vector<8x8xi32>
    %43 = arith.cmpi eq, %41, %42 : vector<8x8xi32>
    %cst_22 = arith.constant 0.000000e+00 : f32
    %44 = vector.shape_cast %19 : vector<8x1xf32> to vector<8x1xf32>
    %45 = vector.broadcast %44 : vector<8x1xf32> to vector<8x8xf32>
    %46 = vector.broadcast %cst_22 : f32 to vector<8x8xf32>
    %47 = arith.select %43, %45, %46 : vector<8x8xi1>, vector<8x8xf32>
    %c1_i32 = arith.constant 1 : i32
    %48 = vector.broadcast %c1_i32 : i32 to vector<8x8xi32>
    %49 = arith.cmpi eq, %41, %48 : vector<8x8xi32>
    %50 = vector.shape_cast %20 : vector<8x1xf32> to vector<8x1xf32>
    %51 = vector.broadcast %50 : vector<8x1xf32> to vector<8x8xf32>
    %52 = arith.select %49, %51, %47 : vector<8x8xi1>, vector<8x8xf32>
    %c2_i32 = arith.constant 2 : i32
    %53 = vector.broadcast %c2_i32 : i32 to vector<8x8xi32>
    %54 = arith.cmpi eq, %41, %53 : vector<8x8xi32>
    %55 = vector.shape_cast %25 : vector<8x1xf32> to vector<8x1xf32>
    %56 = vector.broadcast %55 : vector<8x1xf32> to vector<8x8xf32>
    %57 = arith.select %54, %56, %52 : vector<8x8xi1>, vector<8x8xf32>
    %c3_i32 = arith.constant 3 : i32
    %58 = vector.broadcast %c3_i32 : i32 to vector<8x8xi32>
    %59 = arith.cmpi eq, %41, %58 : vector<8x8xi32>
    %60 = vector.shape_cast %38 : vector<8x1xf32> to vector<8x1xf32>
    %61 = vector.broadcast %60 : vector<8x1xf32> to vector<8x8xf32>
    %62 = arith.select %59, %61, %57 : vector<8x8xi1>, vector<8x8xf32>
    %c4_i32 = arith.constant 4 : i32
    %63 = vector.broadcast %c4_i32 : i32 to vector<8x8xi32>
    %64 = arith.cmpi eq, %41, %63 : vector<8x8xi32>
    %65 = vector.shape_cast %40 : vector<8x1xf32> to vector<8x1xf32>
    %66 = vector.broadcast %65 : vector<8x1xf32> to vector<8x8xf32>
    %67 = arith.select %64, %66, %62 : vector<8x8xi1>, vector<8x8xf32>
    %c0_23 = arith.constant 0 : index
    %c0_24 = arith.constant 0 : index
    %68 = vector.load %arg9[%c0_23, %c0_24] : memref<8x8xf32, #tpu.memory_space<vmem>>, vector<8x8xf32>
    tpu.vector_store %arg9[%c0_23, %c0_24], %67 {strides = array<i32>} : memref<8x8xf32, #tpu.memory_space<vmem>>, vector<8x8xf32>,
    return
  }
  func.func @transform_0(%arg0: i32) -> (i32, i32) {
    %c0_i32 = arith.constant 0 : i32
    %c0_i32_0 = arith.constant 0 : i32
    return %arg0, %c0_i32 : i32, i32
  }
  func.func @transform_1(%arg0: i32) -> (i32, i32) {
    %c0_i32 = arith.constant 0 : i32
    %c0_i32_0 = arith.constant 0 : i32
    return %arg0, %c0_i32 : i32, i32
  }
  func.func @transform_2(%arg0: i32) -> (i32, i32) {
    %c0_i32 = arith.constant 0 : i32
    %c0_i32_0 = arith.constant 0 : i32
    %c0_i32_1 = arith.constant 0 : i32
    return %c0_i32, %c0_i32_0 : i32, i32
  }
  func.func @transform_3(%arg0: i32) -> (i32, i32) {
    %c0_i32 = arith.constant 0 : i32
    %c0_i32_0 = arith.constant 0 : i32
    %c0_i32_1 = arith.constant 0 : i32
    return %c0_i32, %c0_i32_0 : i32, i32
  }
  func.func @transform_4(%arg0: i32) -> (i32, i32) {
    %c0_i32 = arith.constant 0 : i32
    %c0_i32_0 = arith.constant 0 : i32
    %c0_i32_1 = arith.constant 0 : i32
    return %c0_i32, %c0_i32_0 : i32, i32
  }
  func.func @transform_5(%arg0: i32) -> (i32, i32) {
    %c0_i32 = arith.constant 0 : i32
    %c0_i32_0 = arith.constant 0 : i32
    %c0_i32_1 = arith.constant 0 : i32
    return %c0_i32, %c0_i32_0 : i32, i32
  }
  func.func @transform_6(%arg0: i32) -> (i32, i32) {
    %c0_i32 = arith.constant 0 : i32
    %c0_i32_0 = arith.constant 0 : i32
    %c0_i32_1 = arith.constant 0 : i32
    return %c0_i32, %c0_i32_0 : i32, i32
  }
  func.func @transform_7(%arg0: i32) -> (i32, i32) {
    %c0_i32 = arith.constant 0 : i32
    %c0_i32_0 = arith.constant 0 : i32
    %c0_i32_1 = arith.constant 0 : i32
    return %c0_i32, %c0_i32_0 : i32, i32
  }
  func.func @transform_8(%arg0: i32) -> (i32, i32) {
    %c0_i32 = arith.constant 0 : i32
    %c0_i32_0 = arith.constant 0 : i32
    return %arg0, %c0_i32 : i32, i32
  }
}

</mosaic_0001>

<bundles_post_ra>
// kernel: tpu_custom_call.1
= control target key start
LH: loop header
LB: loop body
LE: loop exit
PB: predicated region body
PF: predicated region fallthrough
CT: control target
= control target key end

     0   :  { %13 = vsyncpa [#allocation3], 0  ;;  %s814_s0 = inlined_call_operand.vmem [shape: f32[8,4], index: 0, kind: input, shape index: {}]   ;;  %s815_s1 = inlined_call_operand.vmem [shape: f32[8,1], index: 1, kind: input, shape index: {}]   ;;  %s816_s2 = inlined_call_operand.vmem [shape: f32[4,128], index: 2, kind: input, shape index: {}]   ;;  %s817_s3 = inlined_call_operand.vmem [shape: f32[1,128], index: 3, kind: input, shape index: {}]   ;;  %s818_s4 = inlined_call_operand.hbm [shape: f32[128,128], index: 4, kind: input, shape index: {}]   ;;  %s819_s5 = inlined_call_operand.vmem [shape: f32[1,128], index: 5, kind: input, shape index: {}]   ;;  %s820_s6 = inlined_call_operand.hbm [shape: f32[128,128], index: 6, kind: input, shape index: {}]   ;;  %s821_s7 = inlined_call_operand.vmem [shape: f32[1,128], index: 7, kind: input, shape index: {}]   ;;  %s822_s8 = inlined_call_operand.hbm [shape: f32[8,8], index: 8, kind: output, shape index: {}]  }
   0x1   :  { %14 = vsyncpa [#allocation6], 0 }
   0x2   :  { %15 = vsyncpa [#allocation4], 0  ;;  %s683_s27 = smov [#allocation2]   ;;  %s611_s9 = scalar_lea.hbm %s818_s4, 2048 }
   0x3   :  { %s29_s28 = sshll.u32 %s683_s27, 4  ;;  %p612_p0 = scmp.ne.s32.totalorder %s818_s4, %s611_s9  ;;  %s30_s28 = int_to_ptr.vmem [resolvable:$true] %s29_s28 }
   0x4   :  { %p615_p1 = scmp.lt.u32.totalorder %s611_s9, %s818_s4 }
   0x6   :  { %p617_p2 = pnand %p615_p1, %p612_p0 }
   0x8   :  { %620 = shalt.err (!%p617_p2)
}
   0x9   :  { %s621_s14 = scalar_lea.vmem %s30_s28, 2048  ;;  %p626_p4 = scmp.lt.s32.totalorder %s30_s28, %s30_s28 }
   0xa   :  { %p622_p3 = scmp.ne.s32.totalorder %s30_s28, %s621_s14  ;;  %p627_p5 = scmp.lt.s32.totalorder %s621_s14, %s621_s14 }
   0xc   :  { %p628_p6 = por %p627_p5, %p626_p4 }
   0xe   :  { %p629_p7 = pnand %p628_p6, %p622_p3 }
  0x10   :  { %632 = shalt.err (!%p629_p7)
}
  0x11   :  { %s684_s15 = smov 128   ;;  %s685_s16 = smov 8  }
  0x12   :  { %35 = dma.hbm_to_vmem [thread:$0]  %s818_s4, 2048, %s30_s28, [#allocation3], %s684_s15, %s684_s15, %s685_s16  }
  0x13   :  { %s686_s19 = smov [#allocation5]   ;;  %s633_s23 = scalar_lea.hbm %s820_s6, 2048 }
  0x14   :  { %s43_s20 = sshll.u32 %s686_s19, 4  ;;  %p634_p8 = scmp.ne.s32.totalorder %s820_s6, %s633_s23  ;;  %s44_s20 = int_to_ptr.vmem [resolvable:$true] %s43_s20 }
  0x15   :  { %p637_p9 = scmp.lt.u32.totalorder %s633_s23, %s820_s6 }
  0x17   :  { %p639_p10 = pnand %p637_p9, %p634_p8 }
  0x19   :  { %642 = shalt.err (!%p639_p10)
}
  0x1a   :  { %s643_s29 = scalar_lea.vmem %s44_s20, 2048  ;;  %p648_p12 = scmp.lt.s32.totalorder %s44_s20, %s44_s20 }
  0x1b   :  { %p644_p11 = scmp.ne.s32.totalorder %s44_s20, %s643_s29  ;;  %p649_p13 = scmp.lt.s32.totalorder %s643_s29, %s643_s29 }
  0x1d   :  { %p650_p0 = por %p649_p13, %p648_p12 }
  0x1f   :  { %p651_p1 = pnand %p650_p0, %p644_p11 }
  0x21   :  { %654 = shalt.err (!%p651_p1)
}
  0x22   :  { %49 = dma.hbm_to_vmem [thread:$0]  %s820_s6, 2048, %s44_s20, [#allocation6], %s684_s15, %s684_s15, %s685_s16  }
  0x23   :  { %677 = dma.done.wait [#allocation3], 2048  }
  0x24   :  { %678 = vsyncadd [#allocation3], 4294965248 }
  0x25   :  { %679 = dma.done.wait [#allocation6], 2048  }
  0x26   :  { %680 = vsyncadd [#allocation6], 4294965248  ;;  %v687_v0 = vmov 0.0   ;;  %vm688_vm0 = vmmov 0   ;;  %v689_v1 = vmov 0.0|0.0   ;;  %vm72_vm1 = vcmask 1043456  }
  0x27   :  { %458 = vmatprep.subr.mxu0 %v687_v0  ;;  %460 = vmatprep.mubr.msk.f32.mxu0 %vm688_vm0, %v687_v0  ;;  %vm68_vm2 = vcmask 31744   ;;  %v60_v2 = vld [vmem:[%s816_s2] sm:$0xf]  ;;  %v148_v5 = vld [vmem:[#allocation2 + $0x8] sm:$0xff]  ;;  %v149_v6 = vld [vmem:[#allocation2 + $0x10] sm:$0xff]  ;;  %v690_v62 = vmov 0  }
  0x28   :  { %533 = vmatprep.subr.bf16.mxu1 %v689_v1  ;;  %495 = vmatprep.mubr.msk.f32.mxu1 %vm688_vm0, %v687_v0  ;;  %v58_v3 = vld [vmem:[%s814_s0] sm:$0xff]  ;;  %v150_v7 = vld [vmem:[#allocation2 + $0x18] sm:$0xff]  ;;  %v152_v11 = vld [vmem:[#allocation2 + $0x28] sm:$0xff]  ;;  %v691_v63 = vmov 1   ;;  %s692_s14 = smov 127   ;;  %vm398_vm8 = vcmask 64512  }
  0x29   :  { %v147_v4 = vld [vmem:[#allocation2] sm:$0xff]  ;;  %459 = vmatpush3.msk.msra.mxu0 %vm72_vm1, %v60_v2  ;;  %v537_v9 = vpack.c.bf16 %v150_v7, %v149_v6  ;;  %v153_v13 = vld [vmem:[#allocation2 + $0x30] sm:$0xff]  ;;  %v154_v14 = vld [vmem:[#allocation2 + $0x38] sm:$0xff]  ;;  %594 = vset.pattern.permute.xlu1 %v690_v62 }
  0x2a   :  { %461 = vmatmul.mubr.msk.f32.vlgmr.msra.gmra.mrb[0].mxu0 %vm68_vm2, %v58_v3  ;;  %v534_v8 = vpack.c.bf16 %v148_v5, %v147_v4  ;;  %557 = vmatprep.subr.bf16.mxu0 %v689_v1  ;;  %v151_v10 = vld [vmem:[#allocation2 + $0x20] sm:$0xff]  ;;  %v543_v15 = vpack.c.bf16 %v154_v14, %v153_v13  ;;  %v156_v17 = vld [vmem:[#allocation2 + $0x48] sm:$0xff]  ;;  %v157_v19 = vld [vmem:[#allocation2 + $0x50] sm:$0xff]  ;;  %v694_v14 = vmov 2  }
  0x2b   :  { %530 = vmatprep.mubr.msk.f32.mxu0 %vm688_vm0, %v687_v0  ;;  %v540_v12 = vpack.c.bf16 %v152_v11, %v151_v10  ;;  %v155_v16 = vld [vmem:[#allocation2 + $0x40] sm:$0xff]  ;;  %v158_v20 = vld [vmem:[#allocation2 + $0x58] sm:$0xff]  ;;  %v160_v23 = vld [vmem:[#allocation2 + $0x68] sm:$0xff]  ;;  %595 = vset.pattern.permute.xlu0 %v691_v63 }
  0x2c   :  { %535 = vmatpush3.bf16.msra.mxu1 %v534_v8  ;;  %v546_v18 = vpack.c.bf16 %v156_v17, %v155_v16  ;;  %v549_v21 = vpack.c.bf16 %v158_v20, %v157_v19  ;;  %v159_v22 = vld [vmem:[#allocation2 + $0x60] sm:$0xff]  ;;  %v161_v25 = vld [vmem:[#allocation2 + $0x70] sm:$0xff]  ;;  %v162_v26 = vld [vmem:[#allocation2 + $0x78] sm:$0xff] }
  0x2d   :  { %536 = vmatprep.subr.bf16.mxu1 %v689_v1  ;;  %v552_v24 = vpack.c.bf16 %v160_v23, %v159_v22  ;;  %v555_v27 = vpack.c.bf16 %v162_v26, %v161_v25  ;;  %v241_v28 = vld [vmem:[#allocation5] sm:$0xff]  ;;  %v242_v29 = vld [vmem:[#allocation5 + $0x8] sm:$0xff]  ;;  %v243_v30 = vld [vmem:[#allocation5 + $0x10] sm:$0xff]  ;;  %v363_v26 = vlaneseq }
  0x2e   :  { %v558_v31 = vpack.c.bf16 %v242_v29, %v241_v28  ;;  %v244_v32 = vld [vmem:[#allocation5 + $0x18] sm:$0xff]  ;;  %v245_v34 = vld [vmem:[#allocation5 + $0x20] sm:$0xff]  ;;  %v246_v35 = vld [vmem:[#allocation5 + $0x28] sm:$0xff] }
  0x2f   :  { %v561_v33 = vpack.c.bf16 %v244_v32, %v243_v30  ;;  %v564_v36 = vpack.c.bf16 %v246_v35, %v245_v34  ;;  %v247_v37 = vld [vmem:[#allocation5 + $0x30] sm:$0xff]  ;;  %v248_v38 = vld [vmem:[#allocation5 + $0x38] sm:$0xff]  ;;  %v249_v40 = vld [vmem:[#allocation5 + $0x40] sm:$0xff] }
  0x30   :  { %538 = vmatpush3.bf16.msra.mxu1 %v537_v9  ;;  %559 = vmatpush3.bf16.msra.mxu0 %v558_v31  ;;  %v567_v39 = vpack.c.bf16 %v248_v38, %v247_v37  ;;  %v250_v41 = vld [vmem:[#allocation5 + $0x48] sm:$0xff]  ;;  %v416_v43 = vld [vmem:[%s817_s3] ss:$0 sm:$0xff]  ;;  %v251_v48 = vld [vmem:[#allocation5 + $0x50] sm:$0xff] }
  0x31   :  { %539 = vmatprep.subr.bf16.mxu1 %v689_v1  ;;  %560 = vmatprep.subr.bf16.mxu0 %v689_v1  ;;  %v570_v42 = vpack.c.bf16 %v250_v41, %v249_v40  ;;  %v252_v49 = vld [vmem:[#allocation5 + $0x58] sm:$0xff]  ;;  %v253_v51 = vld [vmem:[#allocation5 + $0x60] sm:$0xff]  ;;  %v254_v52 = vld [vmem:[#allocation5 + $0x68] sm:$0xff] }
  0x32   :  { %v573_v50 = vpack.c.bf16 %v252_v49, %v251_v48  ;;  %v576_v53 = vpack.c.bf16 %v254_v52, %v253_v51  ;;  %v255_v54 = vld [vmem:[#allocation5 + $0x70] sm:$0xff]  ;;  %v256_v55 = vld [vmem:[#allocation5 + $0x78] sm:$0xff]  ;;  %v419_v57 = vld [vmem:[%s819_s5] ss:$0 sm:$0xff]  ;;  %s693_s5 = smov 126  }
  0x33   :  { %v579_v56 = vpack.c.bf16 %v256_v55, %v255_v54  ;;  %v420_v0 = vld [vmem:[%s821_s7] ss:$0 sm:$0xff] }
  0x34   :  { %541 = vmatpush3.bf16.msra.mxu1 %v540_v12  ;;  %562 = vmatpush3.bf16.msra.mxu0 %v561_v33  ;;  %v59_v16 = vld [vmem:[%s815_s1] sm:$0xff]  ;;  %s695_s1 = smov [#allocation7]  }
  0x35   :  { %542 = vmatprep.subr.bf16.mxu1 %v689_v1  ;;  %563 = vmatprep.subr.bf16.mxu0 %v689_v1  ;;  %s406_s16 = sshll.u32 %s695_s1, 4  ;;  %s407_s16 = int_to_ptr.vmem [resolvable:$true] %s406_s16 }
  0x36   :  { %s655_s17 = scalar_lea.vmem %s407_s16, 128  ;;  %p660_p3 = scmp.lt.s32.totalorder %s407_s16, %s407_s16 }
  0x37   :  { %p656_p2 = scmp.ne.s32.totalorder %s407_s16, %s655_s17  ;;  %p661_p4 = scmp.lt.s32.totalorder %s655_s17, %s655_s17 }
  0x38   :  { %544 = vmatpush3.bf16.msra.mxu1 %v543_v15  ;;  %565 = vmatpush3.bf16.msra.mxu0 %v564_v36 }
  0x39   :  { %545 = vmatprep.subr.bf16.mxu1 %v689_v1  ;;  %566 = vmatprep.subr.bf16.mxu0 %v689_v1  ;;  %p662_p5 = por %p661_p4, %p660_p3 }
  0x3b   :  { %p663_p6 = pnand %p662_p5, %p656_p2 }
  0x3c   :  { %547 = vmatpush3.bf16.msra.mxu1 %v546_v18  ;;  %568 = vmatpush3.bf16.msra.mxu0 %v567_v39 }
  0x3d   :  { %548 = vmatprep.subr.bf16.mxu1 %v689_v1  ;;  %569 = vmatprep.subr.bf16.mxu0 %v689_v1 }
  0x40   :  { %550 = vmatpush3.bf16.msra.mxu1 %v549_v21  ;;  %571 = vmatpush3.bf16.msra.mxu0 %v570_v42 }
  0x41   :  { %551 = vmatprep.subr.bf16.mxu1 %v689_v1  ;;  %572 = vmatprep.subr.bf16.mxu0 %v689_v1 }
  0x44   :  { %553 = vmatpush3.bf16.msra.mxu1 %v552_v24  ;;  %574 = vmatpush3.bf16.msra.mxu0 %v573_v50 }
  0x45   :  { %554 = vmatprep.subr.bf16.mxu1 %v689_v1  ;;  %575 = vmatprep.subr.bf16.mxu0 %v689_v1 }
  0x48   :  { %556 = vmatpush3.bf16.msra.mxu1 %v555_v27  ;;  %577 = vmatpush3.bf16.msra.mxu0 %v576_v53  ;;  %v364_v27 = vand.u32 127, %v363_v26 }
  0x49   :  { %578 = vmatprep.subr.bf16.mxu0 %v689_v1 }
  0x4a   :  { %vm365_vm3 = vcmp.eq.s32.totalorder %v364_v27, 0  ;;  %vm371_vm4 = vcmp.eq.s32.totalorder %v364_v27, 1  ;;  %vm377_vm5 = vcmp.eq.s32.totalorder %v364_v27, 2  ;;  %vm384_vm6 = vcmp.eq.s32.totalorder %v364_v27, 3 }
  0x4b   :  { %vm391_vm7 = vcmp.eq.s32.totalorder %v364_v27, 4 }
  0x4c   :  { %580 = vmatpush3.bf16.msra.mxu0 %v579_v56 }
  0xfd   :  { %v142_v44 = vpop.f32.mrb[0].mxu0 }
  0xfe   :  { %v143_v45 = vadd.f32 %v416_v43, %v142_v44  ;;  %v462_v46 = vpop.f32.mrb[1].mxu0 }
 0x100   :  { %599 = vtanh.f32 %v143_v45 }
 0x10a   :  { %v600_v47 = vpop.eup %599 }
 0x10b   :  { %496 = vmatmul.mubr.f32.vlgmr.msra.gmra.mrb[0].mxu1 %v600_v47 }
 0x1de   :  { %v236_v58 = vpop.f32.mrb[0].mxu1 }
 0x1df   :  { %v237_v59 = vadd.f32 %v419_v57, %v236_v58  ;;  %v497_v60 = vpop.f32.mrb[1].mxu1 }
 0x1e1   :  { %601 = vtanh.f32 %v237_v59 }
 0x1eb   :  { %v602_v61 = vpop.eup %601 }
 0x1ec   :  { %531 = vmatmul.mubr.f32.vlgmr.msra.gmra.mrb[2].mxu0 %v602_v61 }
 0x2bf   :  { %v330_v1 = vpop.f32.mrb[2].mxu0 }
 0x2c0   :  { %v331_v2 = vadd.f32 %v420_v0, %v330_v1  ;;  %v532_v3 = vpop.f32.mrb[3].mxu0 }
 0x2c2   :  { %v334_v4 = vmul.f32 1.442695, %v331_v2  ;;  %345 = vrot.lane.b32.xlu0 %v331_v2, %s692_s14 }
 0x2c4   :  { %603 = vpow2.f32 %v334_v4 }
 0x2ce   :  { %v604_v5 = vpop.eup %603 }
 0x2cf   :  { %v336_v6 = vadd.f32 1.0, %v604_v5 }
 0x2d1   :  { %605 = vlog2.f32 %v336_v6 }
 0x2db   :  { %v606_v7 = vpop.eup %605 }
 0x2dc   :  { %v338_v8 = vmul.f32 0.6931472, %v606_v7 }
 0x2de   :  { %607 = vlog2.f32 %v338_v8  ;;  %v341_v9 = vmul.f32 %v338_v8, %v338_v8 }
 0x2e0   :  { %v342_v10 = vmul.f32 2.0, %v341_v9 }
 0x2e2   :  { %609 = vrcp.f32 %v342_v10 }
 0x2e8   :  { %v608_v11 = vpop.eup %607 }
 0x2e9   :  { %v340_v12 = vmul.f32 0.6931472, %v608_v11 }
 0x2eb   :  { %357 = vrot.lane.b32.xlu1 %v340_v12, %s693_s5  ;;  %v362_v15 = vadd.f32 1.4189385, %v340_v12 }
 0x2ec   :  { %v610_v13 = vpop.eup %609 }
 0x2ed   :  { %352 = vrot.lane.b32.xlu0 %v610_v13, %s693_s5 }
 0x2ef   :  { %367 = vperm.xlu1 %594, %v331_v2  }
 0x2f1   :  { %373 = vperm.xlu0 %595, %v331_v2  }
 0x2f3   :  { %596 = vset.pattern.permute.xlu1 %v694_v14 }
 0x2f4   :  { %380 = vperm.xlu1 %596, %v338_v8  }
 0x2f5   :  { %598 = vset.pattern.permute.xlu0 %v694_v14 }
 0x2f6   :  { %394 = vperm.xlu0 %598, %v362_v15  }
 0x2f8   :  { %597 = vset.pattern.permute.xlu1 %v690_v62 }
 0x334   :  { %v346_v17 = vpop.permute.xlu0 %345 }
 0x335   :  { %v348_v18 = vsub.f32 %v59_v16, %v346_v17 }
 0x337   :  { %v349_v19 = vmul.f32 %v348_v18, %v348_v18 }
 0x339   :  { %v350_v20 = vsub.f32 0.0, %v349_v19 }
 0x35d   :  { %v358_v23 = vpop.permute.xlu1 %357 }
 0x35f   :  { %v353_v21 = vpop.permute.xlu0 %352 }
 0x360   :  { %v355_v22 = vmul.f32 %v353_v21, %v350_v20 }
 0x362   :  { %v360_v24 = vsub.f32 %v355_v22, %v358_v23 }
 0x364   :  { %v421_v25 = vadd.f32 -0.9189385, %v360_v24 }
 0x366   :  { %387 = vperm.xlu1 %597, %v421_v25  }
 0x36e   :  { %v368_v28 = vpop.permute.xlu1 %367 }
 0x36f   :  { %v370_v30 = vsel %vm365_vm3, %v368_v28, 0.0 }
 0x370   :  { %v374_v29 = vpop.permute.xlu0 %373 }
 0x371   :  { %v376_v32 = vsel %vm371_vm4, %v374_v29, %v370_v30 }
 0x373   :  { %v381_v31 = vpop.permute.xlu1 %380 }
 0x374   :  { %v383_v33 = vsel %vm377_vm5, %v381_v31, %v376_v32 }
 0x375   :  { %v395_v35 = vpop.permute.xlu0 %394 }
 0x3e5   :  { %v388_v34 = vpop.permute.xlu1 %387 }
 0x3e6   :  { %v390_v36 = vsel %vm384_vm6, %v388_v34, %v383_v33 }
 0x3e7   :  { %v397_v37 = vsel %vm391_vm7, %v395_v35, %v390_v36 }
 0x3e8   :  { %399 = vst.msk [vmem:[#allocation7] sm:$0xff] %vm398_vm8, %v397_v37 }
 0x3e9   :  { %666 = shalt.err (!%p663_p6)
}
 0x3ea   :  { %s667_s20 = scalar_lea.hbm %s822_s8, 128 }
 0x3eb   :  { %p668_p7 = scmp.ne.s32.totalorder %s822_s8, %s667_s20  ;;  %p671_p8 = scmp.lt.u32.totalorder %s667_s20, %s822_s8 }
 0x3ed   :  { %p673_p9 = pnand %p671_p8, %p668_p7 }
 0x3ef   :  { %676 = shalt.err (!%p673_p9)
}
 0x3f0   :  { %409 = dma.vmem_to_hbm [thread:$0]  %s407_s16, 128, %s822_s8, [#allocation4]  }
 0x3f1   :  { %681 = dma.done.wait [#allocation4], 128  }
 0x3f2   :  { %682 = vsyncadd [#allocation4], 4294967168 }
 0x3f3   :  { %413 = vsyncpa [#allocation3], 1 }
 0x3f4   :  { %414 = vsyncpa [#allocation6], 1 }
 0x3f5   :  { %415 = vsyncpa [#allocation4], 1 }

</bundles_post_ra>
